<compile_context>
chip_gen: v7x
topology: tpu7x:2x2x1
jax: 0.10.0
libtpu: 0.0.40
codegen_flags: <defaults>
</compile_context>

<pallas_src>
import math
from functools import partial

import jax
import jax.numpy as jnp
from jax.experimental import pallas as pl
from jax.experimental.pallas import tpu as pltpu


# ----------------------------------------------------------------------------
# PE table construction (done once, outside the hot path)
# ----------------------------------------------------------------------------
def _build_pe(seq_len: int, d_model: int, dtype=jnp.float32) -> jnp.ndarray:
    """Sinusoidal positional-encoding table, shape (1, seq_len, d_model)."""
    position = jnp.arange(seq_len, dtype=jnp.float32)[:, None]              # (S, 1)
    div_term = jnp.exp(
        jnp.arange(0, d_model, 2, dtype=jnp.float32) * (-math.log(10000.0) / d_model)
    )                                                                        # (ceil(D/2),)
    angles = position * div_term                                             # (S, ceil(D/2))
    pe = jnp.zeros((seq_len, d_model), dtype=jnp.float32)
    pe = pe.at[:, 0::2].set(jnp.sin(angles)[:, : (d_model + 1) // 2])
    pe = pe.at[:, 1::2].set(jnp.cos(angles)[:, : d_model // 2])
    return pe[None, :, :].astype(dtype)                                      # (1, S, D)


# ----------------------------------------------------------------------------
# Kernel
# ----------------------------------------------------------------------------
def _pe_add_kernel(x_ref, pe_ref, o_ref):
    # Pure elementwise add; explicit cast guards against any dtype promotion.
    o_ref[...] = (x_ref[...] + pe_ref[...]).astype(o_ref.dtype)


# ----------------------------------------------------------------------------
# Tiling plan
# ----------------------------------------------------------------------------
_MIN_TOTAL_STEPS = 8  # >= ~4 pipelined steps per TensorCore on v7x megacore


def _pick_lane_width(flat_len: int, cap: int = 2048) -> int:
    """Largest multiple of 128 that divides flat_len (<= cap); 0 if none."""
    best = 0
    c = 128
    while c <= min(flat_len, cap):
        if flat_len % c == 0:
            best = c
        c += 128
    return best


def _pick_row_tile(num_rows: int, max_rows: int) -> int:
    """Largest multiple-of-8 divisor of num_rows that is <= max_rows, else num_rows."""
    if num_rows <= max_rows:
        return num_rows
    start = max_rows - (max_rows % 8)
    for t in range(start, 7, -8):
        if num_rows % t == 0:
            return t
    # No suitable tiled divisor (e.g. prime row count): fall back to whole extent.
    return num_rows


def _plan_tiling(B: int, S: int, D: int, itemsize: int, max_block_bytes: int):
    """Return (R, C, TR): per-batch payload re-laid out as (R, C), row tile TR."""
    flat_len = S * D
    C = _pick_lane_width(flat_len)
    if C == 0:
        if flat_len * itemsize <= (8 << 20):
            # Lane-dense fallback: one (1, flat_len) row per batch. Full-extent
            # last dim is always a legal block dim; only the tail vreg is masked.
            return 1, flat_len, 1
        # Very large, awkwardly-sized payload: keep (S, D) and tile along S.
        max_rows = max(8, max_block_bytes // max(1, D * itemsize))
        return S, D, _pick_row_tile(S, max_rows)

    R = flat_len // C
    # Rows per block targeting ~max_block_bytes.
    max_rows = max(8, max_block_bytes // (C * itemsize))
    # Keep the grid deep enough for pipelining + megacore balance: aim for
    # >= _MIN_TOTAL_STEPS grid steps overall whenever the payload allows it.
    want_row_tiles = -(-_MIN_TOTAL_STEPS // B)  # ceil
    if want_row_tiles > 1 and R >= want_row_tiles * 8:
        max_rows = min(max_rows, max(8, R // want_row_tiles))
    return R, C, _pick_row_tile(R, max_rows)


# ----------------------------------------------------------------------------
# Forward (jitted wrapper around the pallas_call)
# ----------------------------------------------------------------------------
@partial(jax.jit, static_argnames=("max_block_bytes",))
def positional_encoding_forward(
    x: jnp.ndarray, pe: jnp.ndarray, *, max_block_bytes: int = 4 << 20
) -> jnp.ndarray:
    """x: (B, S, D); pe: (1, S', D) with S' >= S. Returns x + pe[:, :S, :]."""
    B, S, D = x.shape
    assert pe.shape[-1] == D, f"pe d_model {pe.shape[-1]} != x d_model {D}"
    assert pe.shape[1] >= S, (
        f"sequence length {S} exceeds positional-encoding table length {pe.shape[1]}"
    )

    # These are trace-time no-ops on the common (cached) path where the PE table
    # already has the right length and dtype.
    if pe.shape[1] != S:
        pe = pe[:, :S, :]
    if pe.dtype != x.dtype:
        pe = pe.astype(x.dtype)

    itemsize = jnp.dtype(x.dtype).itemsize
    R, C, TR = _plan_tiling(B, S, D, itemsize, max_block_bytes)

    # Lane-dense re-layout of the per-batch payload (row-major consistent for
    # both x and pe).
    x2 = x.reshape(B, R, C)
    pe2 = pe.reshape(1, R, C)

    block_bytes = TR * C * itemsize
    # Pipeline footprint ~ 3 arrays x 2 buffers x block; leave headroom, stay
    # well under v7x's 64 MiB physical VMEM.
    vmem_limit = int(min(48 << 20, max(16 << 20, 8 * block_bytes)))

    grid = (R // TR, B)  # batch innermost -> PE tile DMA'd once per row-tile

    out = pl.pallas_call(
        _pe_add_kernel,
        out_shape=jax.ShapeDtypeStruct((B, R, C), x.dtype),
        grid_spec=pltpu.PrefetchScalarGridSpec(
            num_scalar_prefetch=0,
            grid=grid,
            in_specs=[
                pl.BlockSpec((1, TR, C), lambda rt, b: (b, rt, 0)),  # x: varies with b, rt
                pl.BlockSpec((1, TR, C), lambda rt, b: (0, rt, 0)),  # pe: independent of b
            ],
            out_specs=pl.BlockSpec((1, TR, C), lambda rt, b: (b, rt, 0)),
        ),
        compiler_params=pltpu.CompilerParams(
            # Both axes are independent -> shard across v7x's two TensorCores.
            dimension_semantics=("parallel", "parallel"),
            vmem_limit_bytes=vmem_limit,
        ),
        # Output reuses x2's buffer (pure elementwise update).
        input_output_aliases={0: 0},
    )(x2, pe2)

    # Dropout in eval mode is the identity.
    return out.reshape(B, S, D)


# ----------------------------------------------------------------------------
# Module-like wrapper (caches the PE table in the compute dtype at init)
# ----------------------------------------------------------------------------
class PositionalEncodingPallas:
    """Eval-mode PositionalEncoding: x + pe[:, :x.shape[1], :]; dropout is identity."""

    def __init__(self, d_model: int, seq_len: int, dropout: float = 0.0,
                 dtype=jnp.float32, max_block_bytes: int = 4 << 20):
        self.d_model = d_model
        self.seq_len = seq_len
        self.dropout = dropout  # eval-mode contract: identity
        self.max_block_bytes = max_block_bytes
        # Cached once, in the exact compute dtype -> no per-call slice/convert.
        self.pe = _build_pe(seq_len, d_model, dtype)

    def __call__(self, x: jnp.ndarray) -> jnp.ndarray:
        assert x.shape[-1] == self.d_model, (
            f"expected d_model={self.d_model}, got {x.shape[-1]}"
        )
        assert x.shape[1] <= self.seq_len, (
            f"sequence length {x.shape[1]} exceeds table length {self.seq_len}"
        )
        return positional_encoding_forward(
            x, self.pe, max_block_bytes=self.max_block_bytes
        )


# ----------------------------------------------------------------------------
# Demo / self-check
# ----------------------------------------------------------------------------
if __name__ == "__main__":
    # Small shapes consistent with the module: d_model=32, seq_len=8, batch=2.
    d_model, seq_len, batch = 32, 8, 2

    key = jax.random.PRNGKey(0)
    x = jax.random.normal(key, (batch, seq_len, d_model), dtype=jnp.float32)

    module = PositionalEncodingPallas(d_model, seq_len, dropout=0.1)
    out = jax.block_until_ready(module(x))

    ref = x + module.pe[:, :seq_len, :]
    assert out.shape == x.shape
    assert jnp.allclose(out, ref, atol=1e-6), "mismatch vs reference (lane-dense path)"

    # Fallback path (S*D not a multiple of 128): flattened lane-dense layout.
    d_model2, seq_len2 = 24, 5
    module2 = PositionalEncodingPallas(d_model2, seq_len2, dropout=0.1)
    x2 = jax.random.normal(jax.random.PRNGKey(1), (batch, seq_len2, d_model2), jnp.float32)
    out2 = jax.block_until_ready(module2(x2))
    ref2 = x2 + module2.pe[:, :seq_len2, :]
    assert jnp.allclose(out2, ref2, atol=1e-6), "mismatch vs reference (fallback path)"

    # Medium shape exercising row-tiling + grid-depth cap (TR < R, multi-step grid).
    d_model3, seq_len3 = 256, 256
    module3 = PositionalEncodingPallas(d_model3, seq_len3, dropout=0.1)
    x3 = jax.random.normal(jax.random.PRNGKey(2), (batch, seq_len3, d_model3), jnp.float32)
    out3 = jax.block_until_ready(module3(x3))
    ref3 = x3 + module3.pe[:, :seq_len3, :]
    assert jnp.allclose(out3, ref3, atol=1e-6), "mismatch vs reference (tiled path)"

    print("KERNEL_OK")
</pallas_src>

<mosaic_0001>
module attributes {stable_mosaic.version = 11 : i64} {
  func.func @_pe_add_kernel(%arg0: i32, %arg1: i32, %arg2: memref<1x1x256xf32, #tpu.memory_space<vmem>>, %arg3: memref<1x1x256xf32, #tpu.memory_space<vmem>>, %arg4: memref<1x1x256xf32, #tpu.memory_space<vmem>>) attributes {dimension_semantics = [#tpu.dimension_semantics<parallel>, #tpu.dimension_semantics<parallel>], iteration_bounds = array<i64: 1, 2>, scalar_prefetch = 0 : i64, scratch_operands = 0 : i64, tpu.core_type = #tpu.core_type<tc>, window_params = [{transform_indices = @transform_0, window_bounds = array<i64: 1, 1, 256>}, {transform_indices = @transform_1, window_bounds = array<i64: 1, 1, 256>}, {transform_indices = @transform_2, window_bounds = array<i64: 1, 1, 256>}]} {
    %c0 = arith.constant 0 : index
    %c0_0 = arith.constant 0 : index
    %c0_1 = arith.constant 0 : index
    %0 = vector.load %arg2[%c0, %c0_0, %c0_1] : memref<1x1x256xf32, #tpu.memory_space<vmem>>, vector<1x1x256xf32>
    %c0_2 = arith.constant 0 : index
    %c0_3 = arith.constant 0 : index
    %c0_4 = arith.constant 0 : index
    %1 = vector.load %arg3[%c0_2, %c0_3, %c0_4] : memref<1x1x256xf32, #tpu.memory_space<vmem>>, vector<1x1x256xf32>
    %2 = arith.addf %0, %1 : vector<1x1x256xf32>
    %c0_5 = arith.constant 0 : index
    %c0_6 = arith.constant 0 : index
    %c0_7 = arith.constant 0 : index
    %3 = vector.load %arg4[%c0_5, %c0_6, %c0_7] : memref<1x1x256xf32, #tpu.memory_space<vmem>>, vector<1x1x256xf32>
    tpu.vector_store %arg4[%c0_5, %c0_6, %c0_7], %2 {strides = array<i32>} : memref<1x1x256xf32, #tpu.memory_space<vmem>>, vector<1x1x256xf32>,
    return
  }
  func.func @transform_0(%arg0: i32, %arg1: i32) -> (i32, i32, i32) {
    %c0_i32 = arith.constant 0 : i32
    %c0_i32_0 = arith.constant 0 : i32
    return %arg1, %arg0, %c0_i32 : i32, i32, i32
  }
  func.func @transform_1(%arg0: i32, %arg1: i32) -> (i32, i32, i32) {
    %c0_i32 = arith.constant 0 : i32
    %c0_i32_0 = arith.constant 0 : i32
    %c0_i32_1 = arith.constant 0 : i32
    return %c0_i32, %arg0, %c0_i32_0 : i32, i32, i32
  }
  func.func @transform_2(%arg0: i32, %arg1: i32) -> (i32, i32, i32) {
    %c0_i32 = arith.constant 0 : i32
    %c0_i32_0 = arith.constant 0 : i32
    return %arg1, %arg0, %c0_i32 : i32, i32, i32
  }
}

</mosaic_0001>

<bundles_post_ra>
// kernel: positional_encoding_forward.1
= control target key start
LH: loop header
LB: loop body
LE: loop exit
PB: predicated region body
PF: predicated region fallthrough
CT: control target
= control target key end

     0   :  { %s372_s9 = smov 0   ;;  %s374_s10 = smov 0   ;;  %s396_s0 = inlined_call_operand.vmem [shape: f32[2,1,256], index: 0, kind: input, shape index: {}, may-alias: {0,2}]   ;;  %s397_s1 = inlined_call_operand.vmem [shape: f32[1,1,256], index: 1, kind: input, shape index: {}]   ;;  %s398_s2 = inlined_call_operand.vmem [shape: f32[2,1,256], index: 2, kind: output, shape index: {}, may-alias: {0,2}]  }
   0x1   :  { %s376_s11 = smov 0  }
   0x2 LB: > { %s21_s12 = sadd.s32 1, %s351_s10  ;;  %p304_p0 = scmp.ge.s32.totalorder %s355_s11, 1  ;;  %s355_s11 = sphi %s376_s11, %s12_s11   ;;  %s351_s10 = sphi %s374_s10, %s400_s10   ;;  %s347_s9 = sphi %s372_s9, %s399_s9  }
   0x3   : > { %p22_p1 = scmp.ge.s32.totalorder %s21_s12, 2  ;;  %p140_p2 = scmp.lt.s32.totalorder %s355_s11, 3 }
   0x5   : > { %s402_s12 = smov (%p22_p1, %s21_s12), 0  ;;  %p141_p3 = pnand %p304_p0, %p140_p2 }
   0x6   : > { %p172_p4 = scmp.lt.s32.totalorder (!%p141_p3), %s347_s9, 1  ;;  %v195_v0 = vlaneseq (!%p141_p3)  ;;  %v193_v1 = vld [vmem:[%s397_s1] sm:$0x3] (!%p141_p3) }
   0x7   : > { %144 = sbr.rel (%p141_p3) target bundleno = 21 (0x15), region = 28 }
   0x8   : > { %vm197_vm0 = vcmp.lt.s32.totalorder (!%p141_p3), %v195_v0, 256 }
   0xe   : > { %s404_s9 = smov (!%p172_p4, %s347_s9), 1 }
   0xf   : > { %s305_s13 = sshll.u32 %s404_s9, 1 }
  0x10   : > { %s179_s18 = scalar_lea.vmem %s396_s0, %s305_s13  ;;  %s191_s21 = scalar_lea.vmem %s398_s2, %s305_s13 }
  0x11   : > { %v192_v2 = vld [vmem:[%s179_s18] sm:$0x3] }
  0x12   : > { %v194_v3 = vadd.f32 %v193_v1, %v192_v2 }
  0x14   : > { %199 = vst.msk [vmem:[%s191_s21] sm:$0x3] %vm197_vm0, %v194_v3 }
  0x15 PF: > { %s12_s11 = sadd.s32 1, %s355_s11   ;;  %s399_s9 = smov %s351_s10 }
  0x16   : > { %p9_p5 = scmp.ge.s32.totalorder %s12_s11, 4   ;;  %s400_s10 = smov %s402_s12 }
  0x18   :  { %11 = sbr.rel (!%p9_p5) target bundleno = 2 (0x2), region = 61 }

</bundles_post_ra>
